<compile_context>
chip_gen: v5e
topology: v5e:2x2
jax: 0.10.0
libtpu: 0.0.40
codegen_flags: <defaults>
</compile_context>

<pallas_src>
import functools
import math

import jax
import jax.numpy as jnp
import numpy as np
from jax.experimental import pallas as pl
from jax.experimental.pallas import tpu as pltpu


# ----------------------------------------------------------------------------
# Helpers
# ----------------------------------------------------------------------------
def _round_up(x, m):
    return ((x + m - 1) // m) * m


def _choose_m_tiling(M, tm_max=256):
    """Pad/tile the flattened batch dim.

    8-aligned (sublane), capped at tm_max rows, and split into >= 2 grid steps
    whenever possible so both v7x TensorCores get work."""
    Mp = _round_up(max(M, 1), 8)
    if Mp <= 8:
        return Mp, Mp
    tm = min(tm_max, _round_up((Mp + 1) // 2, 8))
    Mp = _round_up(Mp, tm)
    return Mp, tm


# ----------------------------------------------------------------------------
# Fused MLP kernel: all layers in one pallas_call, activation resident in VMEM
# ----------------------------------------------------------------------------
def _mlp_kernel(x_ref, w_ref, b_ref, o_ref, *, n_linear):
    """x_ref: [tm, D] f32    w_ref: [L, D, D] bf16 (zero-padded, resident)
       b_ref: [L, 1, D] f32  o_ref: [tm, D] f32"""
    h = x_ref[...].astype(jnp.float32)
    for l in range(n_linear):  # static unroll; n_linear is small
        # bf16 operands feed the MXU at full rate; accumulate in f32.
        y = jnp.dot(h.astype(jnp.bfloat16), w_ref[l],
                    preferred_element_type=jnp.float32)
        y = y + b_ref[l]  # [tm, D] + [1, D] broadcast, f32
        if l < n_linear - 1:
            # Numerically stable softplus, f32 on VPU/EUP.
            # Padded columns get softplus(0)=log 2, which is harmless because
            # the next layer's padded weight rows are zero.
            y = jnp.maximum(y, 0.0) + jnp.log1p(jnp.exp(-jnp.abs(y)))
        h = y
    o_ref[...] = h.astype(o_ref.dtype)


# ----------------------------------------------------------------------------
# Parameter construction / preparation
# ----------------------------------------------------------------------------
def init_mlp_params(key, input_dim, output_dim, n_layers, hidden_dim):
    """Mirror the PyTorch module __init__ layer structure (f32 master params)."""
    assert n_layers > 0
    if n_layers == 1:
        dims = [(input_dim, output_dim)]
    else:
        dims = [(input_dim, hidden_dim)]
        for _ in range(n_layers - 1):
            dims.append((hidden_dim, hidden_dim))
        dims.append((hidden_dim, output_dim))

    params = []
    keys = jax.random.split(key, len(dims))
    for k, (din, dout) in zip(keys, dims):
        kw, kb = jax.random.split(k)
        bound = 1.0 / math.sqrt(din)
        W = jax.random.uniform(kw, (din, dout), jnp.float32, -bound, bound)
        b = jax.random.uniform(kb, (dout,), jnp.float32, -bound, bound)
        params.append((W, b))
    return params


def prepare_mlp_params(params):
    """Pad + stack + cast ONCE (hoisted out of the forward path).

    All layer dims are padded with zeros to a common lane-dense D (multiple of
    128).  Zero padding in the weight rows is exactly what keeps the fused
    padded layout correct between layers."""
    dims = [params[0][0].shape[0]] + [W.shape[1] for W, _ in params]
    D = max(_round_up(d, 128) for d in dims)
    w_stack = jnp.stack([
        jnp.pad(W, ((0, D - W.shape[0]), (0, D - W.shape[1]))).astype(jnp.bfloat16)
        for W, _ in params])                                     # (L, D, D) bf16
    b_stack = jnp.stack([
        jnp.pad(b, (0, D - b.shape[0])).astype(jnp.float32).reshape(1, D)
        for _, b in params])                                     # (L, 1, D) f32
    return w_stack, b_stack, dims[0], dims[-1]


# ----------------------------------------------------------------------------
# Forward pass
# ----------------------------------------------------------------------------
@functools.partial(jax.jit, static_argnames=("out_dim",))
def mlp_forward(x, w_stack, b_stack, *, out_dim):
    """Fused Pallas MLP forward. x: [..., in_dim] -> [..., out_dim]."""
    lead = x.shape[:-1]
    in_dim = x.shape[-1]
    M = int(np.prod(lead)) if lead else 1
    L, D, _ = w_stack.shape
    assert in_dim <= D and out_dim <= D

    Mp, tm = _choose_m_tiling(M)
    xp = jnp.pad(x.reshape(M, in_dim).astype(jnp.float32),
                 ((0, Mp - M), (0, D - in_dim)))

    # Explicit VMEM budget (resident weights/biases assumed double-buffered,
    # x/out tiles double-buffered, headroom for unrolled-layer temporaries).
    est = (2 * L * D * D * 2       # bf16 weights
           + 2 * L * D * 4         # f32 biases
           + 2 * tm * D * 4        # x tiles
           + 2 * tm * D * 4        # out tiles
           + 8 * tm * D * 4)       # layer temporaries / casts
    if est > 48 * 2**20:
        # TODO(synk): tile the hidden dimension inside the kernel for very
        # large hidden_dim instead of keeping all weights resident.
        raise ValueError("fused MLP weights exceed single-call VMEM budget")
    vmem_limit = int(min(48 * 2**20, max(16 * 2**20, 2 * est)))

    kernel = functools.partial(_mlp_kernel, n_linear=L)
    out = pl.pallas_call(
        kernel,
        out_shape=jax.ShapeDtypeStruct((Mp, D), jnp.float32),
        grid_spec=pltpu.PrefetchScalarGridSpec(
            num_scalar_prefetch=0,
            grid=(Mp // tm,),
            in_specs=[
                pl.BlockSpec((tm, D), lambda i: (i, 0)),       # x tile
                pl.BlockSpec((L, D, D), lambda i: (0, 0, 0)),  # all weights, resident
                pl.BlockSpec((L, 1, D), lambda i: (0, 0, 0)),  # all biases, resident
            ],
            out_specs=pl.BlockSpec((tm, D), lambda i: (i, 0)),
        ),
        compiler_params=pltpu.CompilerParams(
            dimension_semantics=("parallel",),
            vmem_limit_bytes=vmem_limit,
        ),
    )(xp, w_stack, b_stack)

    return out[:M, :out_dim].reshape(*lead, out_dim)


# ----------------------------------------------------------------------------
# float64 numpy reference with the same semantics
# ----------------------------------------------------------------------------
def mlp_ref_numpy(x, params, n_layers):
    h = np.asarray(x, dtype=np.float64).reshape(-1, x.shape[-1])
    ps = [(np.asarray(W, np.float64), np.asarray(b, np.float64)) for W, b in params]
    if n_layers > 1:
        for (W, b) in ps[:-1]:
            h = np.logaddexp(h @ W + b, 0.0)  # softplus
        out = h @ ps[-1][0] + ps[-1][1]
    else:
        out = h @ ps[0][0] + ps[0][1]
    return out.reshape(*x.shape[:-1], out.shape[-1])


if __name__ == "__main__":
    key = jax.random.PRNGKey(0)
    k_params, k_params1, k_x = jax.random.split(key, 3)

    # Small but padding/tiling-exercising config: n_layers=3 -> 4 Linear
    # layers with softplus after the first three; unaligned dims (64, 48)
    # exercise the zero-padded lane-dense layout.
    batch, input_dim, hidden_dim, output_dim, n_layers = 16, 64, 128, 48, 3

    params = init_mlp_params(k_params, input_dim, output_dim, n_layers, hidden_dim)
    w_stack, b_stack, _, out_dim = prepare_mlp_params(params)
    x = jax.random.normal(k_x, (batch, input_dim), jnp.float32)

    out = jax.block_until_ready(mlp_forward(x, w_stack, b_stack, out_dim=out_dim))
    ref = mlp_ref_numpy(x, params, n_layers)
    assert out.shape == (batch, output_dim)
    # bf16 MXU operands with f32 accumulation -> mildly relaxed tolerance.
    np.testing.assert_allclose(np.asarray(out), ref, rtol=2e-2, atol=2e-2)

    # Also cover the n_layers == 1 branch (single Linear, no activation).
    params1 = init_mlp_params(k_params1, input_dim, output_dim, 1, hidden_dim)
    w1, b1, _, out_dim1 = prepare_mlp_params(params1)
    out1 = jax.block_until_ready(mlp_forward(x, w1, b1, out_dim=out_dim1))
    ref1 = mlp_ref_numpy(x, params1, 1)
    assert out1.shape == (batch, output_dim)
    np.testing.assert_allclose(np.asarray(out1), ref1, rtol=2e-2, atol=2e-2)

    print("KERNEL_OK")
</pallas_src>

<mosaic_0001>
module attributes {stable_mosaic.version = 11 : i64} {
  func.func @_mlp_kernel(%arg0: i32, %arg1: memref<8x128xf32, #tpu.memory_space<vmem>>, %arg2: memref<4x128x128xbf16, #tpu.memory_space<vmem>>, %arg3: memref<4x1x128xf32, #tpu.memory_space<vmem>>, %arg4: memref<8x128xf32, #tpu.memory_space<vmem>>) attributes {dimension_semantics = [#tpu.dimension_semantics<parallel>], iteration_bounds = array<i64: 2>, scalar_prefetch = 0 : i64, scratch_operands = 0 : i64, tpu.core_type = #tpu.core_type<tc>, window_params = [{transform_indices = @transform_0, window_bounds = array<i64: 8, 128>}, {pipeline_mode = #tpu.pipeline_mode<synchronous>, transform_indices = @transform_1, window_bounds = array<i64: 4, 128, 128>}, {pipeline_mode = #tpu.pipeline_mode<synchronous>, transform_indices = @transform_2, window_bounds = array<i64: 4, 1, 128>}, {transform_indices = @transform_3, window_bounds = array<i64: 8, 128>}]} {
    %c0 = arith.constant 0 : index
    %c0_0 = arith.constant 0 : index
    %0 = vector.load %arg1[%c0, %c0_0] : memref<8x128xf32, #tpu.memory_space<vmem>>, vector<8x128xf32>
    %1 = arith.truncf %0 : vector<8x128xf32> to vector<8x128xbf16>
    %c0_1 = arith.constant 0 : index
    %c0_2 = arith.constant 0 : index
    %c0_3 = arith.constant 0 : index
    %2 = vector.load %arg2[%c0_1, %c0_2, %c0_3] : memref<4x128x128xbf16, #tpu.memory_space<vmem>>, vector<1x128x128xbf16>
    %3 = vector.shape_cast %2 : vector<1x128x128xbf16> to vector<128x128xbf16>
    %cst = arith.constant dense<0.000000e+00> : vector<8x128xf32>
    %4 = tpu.matmul %1, %3, %cst {dimension_numbers = #tpu.dot_dimension_numbers<[1], [0], [0], [1], [0, 0, 1, 1], [], []>} : vector<8x128xbf16>, vector<128x128xbf16>, vector<8x128xf32> -> vector<8x128xf32>
    %c0_4 = arith.constant 0 : index
    %c0_5 = arith.constant 0 : index
    %c0_6 = arith.constant 0 : index
    %5 = vector.load %arg3[%c0_4, %c0_5, %c0_6] : memref<4x1x128xf32, #tpu.memory_space<vmem>>, vector<1x1x128xf32>
    %6 = vector.shape_cast %5 : vector<1x1x128xf32> to vector<1x128xf32>
    %7 = vector.broadcast %6 : vector<1x128xf32> to vector<8x128xf32>
    %8 = arith.addf %4, %7 : vector<8x128xf32>
    %cst_7 = arith.constant 0.000000e+00 : f32
    %9 = vector.broadcast %cst_7 : f32 to vector<8x128xf32>
    %10 = arith.maximumf %8, %9 : vector<8x128xf32>
    %11 = math.absf %8 : vector<8x128xf32>
    %cst_8 = arith.constant 0.000000e+00 : f32
    %12 = vector.broadcast %cst_8 : f32 to vector<8x128xf32>
    %13 = arith.subf %12, %11 : vector<8x128xf32>
    %14 = math.exp %13 : vector<8x128xf32>
    %15 = math.log1p %14 : vector<8x128xf32>
    %16 = arith.addf %10, %15 : vector<8x128xf32>
    %17 = arith.truncf %16 : vector<8x128xf32> to vector<8x128xbf16>
    %c1 = arith.constant 1 : index
    %c0_9 = arith.constant 0 : index
    %c0_10 = arith.constant 0 : index
    %18 = vector.load %arg2[%c1, %c0_9, %c0_10] : memref<4x128x128xbf16, #tpu.memory_space<vmem>>, vector<1x128x128xbf16>
    %19 = vector.shape_cast %18 : vector<1x128x128xbf16> to vector<128x128xbf16>
    %cst_11 = arith.constant dense<0.000000e+00> : vector<8x128xf32>
    %20 = tpu.matmul %17, %19, %cst_11 {dimension_numbers = #tpu.dot_dimension_numbers<[1], [0], [0], [1], [0, 0, 1, 1], [], []>} : vector<8x128xbf16>, vector<128x128xbf16>, vector<8x128xf32> -> vector<8x128xf32>
    %c1_12 = arith.constant 1 : index
    %c0_13 = arith.constant 0 : index
    %c0_14 = arith.constant 0 : index
    %21 = vector.load %arg3[%c1_12, %c0_13, %c0_14] : memref<4x1x128xf32, #tpu.memory_space<vmem>>, vector<1x1x128xf32>
    %22 = vector.shape_cast %21 : vector<1x1x128xf32> to vector<1x128xf32>
    %23 = vector.broadcast %22 : vector<1x128xf32> to vector<8x128xf32>
    %24 = arith.addf %20, %23 : vector<8x128xf32>
    %cst_15 = arith.constant 0.000000e+00 : f32
    %25 = vector.broadcast %cst_15 : f32 to vector<8x128xf32>
    %26 = arith.maximumf %24, %25 : vector<8x128xf32>
    %27 = math.absf %24 : vector<8x128xf32>
    %cst_16 = arith.constant 0.000000e+00 : f32
    %28 = vector.broadcast %cst_16 : f32 to vector<8x128xf32>
    %29 = arith.subf %28, %27 : vector<8x128xf32>
    %30 = math.exp %29 : vector<8x128xf32>
    %31 = math.log1p %30 : vector<8x128xf32>
    %32 = arith.addf %26, %31 : vector<8x128xf32>
    %33 = arith.truncf %32 : vector<8x128xf32> to vector<8x128xbf16>
    %c2 = arith.constant 2 : index
    %c0_17 = arith.constant 0 : index
    %c0_18 = arith.constant 0 : index
    %34 = vector.load %arg2[%c2, %c0_17, %c0_18] : memref<4x128x128xbf16, #tpu.memory_space<vmem>>, vector<1x128x128xbf16>
    %35 = vector.shape_cast %34 : vector<1x128x128xbf16> to vector<128x128xbf16>
    %cst_19 = arith.constant dense<0.000000e+00> : vector<8x128xf32>
    %36 = tpu.matmul %33, %35, %cst_19 {dimension_numbers = #tpu.dot_dimension_numbers<[1], [0], [0], [1], [0, 0, 1, 1], [], []>} : vector<8x128xbf16>, vector<128x128xbf16>, vector<8x128xf32> -> vector<8x128xf32>
    %c2_20 = arith.constant 2 : index
    %c0_21 = arith.constant 0 : index
    %c0_22 = arith.constant 0 : index
    %37 = vector.load %arg3[%c2_20, %c0_21, %c0_22] : memref<4x1x128xf32, #tpu.memory_space<vmem>>, vector<1x1x128xf32>
    %38 = vector.shape_cast %37 : vector<1x1x128xf32> to vector<1x128xf32>
    %39 = vector.broadcast %38 : vector<1x128xf32> to vector<8x128xf32>
    %40 = arith.addf %36, %39 : vector<8x128xf32>
    %cst_23 = arith.constant 0.000000e+00 : f32
    %41 = vector.broadcast %cst_23 : f32 to vector<8x128xf32>
    %42 = arith.maximumf %40, %41 : vector<8x128xf32>
    %43 = math.absf %40 : vector<8x128xf32>
    %cst_24 = arith.constant 0.000000e+00 : f32
    %44 = vector.broadcast %cst_24 : f32 to vector<8x128xf32>
    %45 = arith.subf %44, %43 : vector<8x128xf32>
    %46 = math.exp %45 : vector<8x128xf32>
    %47 = math.log1p %46 : vector<8x128xf32>
    %48 = arith.addf %42, %47 : vector<8x128xf32>
    %49 = arith.truncf %48 : vector<8x128xf32> to vector<8x128xbf16>
    %c3 = arith.constant 3 : index
    %c0_25 = arith.constant 0 : index
    %c0_26 = arith.constant 0 : index
    %50 = vector.load %arg2[%c3, %c0_25, %c0_26] : memref<4x128x128xbf16, #tpu.memory_space<vmem>>, vector<1x128x128xbf16>
    %51 = vector.shape_cast %50 : vector<1x128x128xbf16> to vector<128x128xbf16>
    %cst_27 = arith.constant dense<0.000000e+00> : vector<8x128xf32>
    %52 = tpu.matmul %49, %51, %cst_27 {dimension_numbers = #tpu.dot_dimension_numbers<[1], [0], [0], [1], [0, 0, 1, 1], [], []>} : vector<8x128xbf16>, vector<128x128xbf16>, vector<8x128xf32> -> vector<8x128xf32>
    %c3_28 = arith.constant 3 : index
    %c0_29 = arith.constant 0 : index
    %c0_30 = arith.constant 0 : index
    %53 = vector.load %arg3[%c3_28, %c0_29, %c0_30] : memref<4x1x128xf32, #tpu.memory_space<vmem>>, vector<1x1x128xf32>
    %54 = vector.shape_cast %53 : vector<1x1x128xf32> to vector<1x128xf32>
    %55 = vector.broadcast %54 : vector<1x128xf32> to vector<8x128xf32>
    %56 = arith.addf %52, %55 : vector<8x128xf32>
    %c0_31 = arith.constant 0 : index
    %c0_32 = arith.constant 0 : index
    %57 = vector.load %arg4[%c0_31, %c0_32] : memref<8x128xf32, #tpu.memory_space<vmem>>, vector<8x128xf32>
    tpu.vector_store %arg4[%c0_31, %c0_32], %56 {strides = array<i32>} : memref<8x128xf32, #tpu.memory_space<vmem>>, vector<8x128xf32>,
    return
  }
  func.func @transform_0(%arg0: i32) -> (i32, i32) {
    %c0_i32 = arith.constant 0 : i32
    %c0_i32_0 = arith.constant 0 : i32
    return %arg0, %c0_i32 : i32, i32
  }
  func.func @transform_1(%arg0: i32) -> (i32, i32, i32) {
    %c0_i32 = arith.constant 0 : i32
    %c0_i32_0 = arith.constant 0 : i32
    %c0_i32_1 = arith.constant 0 : i32
    %c0_i32_2 = arith.constant 0 : i32
    return %c0_i32, %c0_i32_0, %c0_i32_1 : i32, i32, i32
  }
  func.func @transform_2(%arg0: i32) -> (i32, i32, i32) {
    %c0_i32 = arith.constant 0 : i32
    %c0_i32_0 = arith.constant 0 : i32
    %c0_i32_1 = arith.constant 0 : i32
    %c0_i32_2 = arith.constant 0 : i32
    return %c0_i32, %c0_i32_0, %c0_i32_1 : i32, i32, i32
  }
  func.func @transform_3(%arg0: i32) -> (i32, i32) {
    %c0_i32 = arith.constant 0 : i32
    %c0_i32_0 = arith.constant 0 : i32
    return %arg0, %c0_i32 : i32, i32
  }
}

</mosaic_0001>

<bundles_post_ra>
// kernel: mlp_forward.1
= control target key start
LH: loop header
LB: loop body
LE: loop exit
PB: predicated region body
PF: predicated region fallthrough
CT: control target
= control target key end

     0   :  { %8 = vsyncpa [#allocation3], 0  ;;  %s1122_s0 = inlined_call_operand.vmem [shape: f32[16,128], index: 0, kind: input, shape index: {}]   ;;  %s1123_s1 = inlined_call_operand.hbm [shape: bf16[4,128,128], index: 1, kind: input, shape index: {}]   ;;  %s1124_s2 = inlined_call_operand.vmem [shape: f32[4,1,128], index: 2, kind: input, shape index: {}]   ;;  %s1125_s3 = inlined_call_operand.hbm [shape: f32[16,128], index: 3, kind: output, shape index: {}]  }
   0x1   :  { %9 = vsyncpa [#allocation4], 0 }
   0x2   :  { %11 = vsyncpa [#allocation4 + $0x1], 0  ;;  %s1015_s12 = smov 0   ;;  %s1017_s13 = smov 0  }
   0x3   :  { %s1019_s14 = smov 0   ;;  %s1021_s15 = smov 0  }
   0x4 LB: > { %s1036_s16 = sadd.s32 4294967295, %s990_s15   ;;  %s651_s17 = sadd.s32 4294967294, %s990_s15   ;;  %s990_s15 = sphi %s1021_s15, %s1131_s15   ;;  %s986_s14 = sphi %s1019_s14, %s1130_s14   ;;  %s982_s13 = sphi %s1017_s13, %s1129_s13   ;;  %s978_s12 = sphi %s1015_s12, %s1128_s12  }
   0x5   : > { %s1040_s18 = sadd.s32 1, %s990_s15   ;;  %s92_s19 = sadd.s32 1, %s986_s14 }
   0x6   : > { %s89_s20 = ssub.s32 %s990_s15, %s1040_s18  ;;  %p102_p0 = scmp.ne.s32.totalorder %s986_s14, %s982_s13 }
   0x7   : > { %p90_p1 = scmp.eq.s32.totalorder %s89_s20, 0  ;;  %p103_p2 = scmp.eq.s32.totalorder %s1036_s16, 1 }
   0x8   : > { %p108_p3 = scmp.ne.s32.totalorder %s982_s13, %s978_s12  ;;  %p109_p4 = scmp.eq.s32.totalorder %s651_s17, 1 }
   0x9   : > { %s1051_s21 = scalar_select %p90_p1, %s986_s14, %s92_s19  }
   0xa   : > { %p1053_p5 = por %p103_p2, %p102_p0  ;;  %p1057_p6 = por %p109_p4, %p108_p3 }
   0xb   : > { %p652_p7 = scmp.ge.s32.totalorder %s990_s15, 1  ;;  %p116_p8 = scmp.lt.s32.totalorder %s990_s15, 3 }
   0xc   : > { %p840_p9 = scmp.eq.s32.totalorder %s1036_s16, 0  ;;  %s127_s26 = sshll.u32 %s1123_s1, 4  ;;  %s128_s26 = int_to_ptr.hbm [resolvable:$true] %s127_s26 }
   0xd   : > { %p117_p10 = pnand %p652_p7, %p116_p8  ;;  %s992_s27 = smov [#allocation2]  }
   0xe   : > { %s129_s28 = sshll.u32 %s992_s27, 4  ;;  %s993_s29 = smov 64   ;;  %s130_s28 = int_to_ptr.vmem [resolvable:$true] %s129_s28 }
   0xf   : > { %p832_p11 = pneg %p117_p10  ;;  %s994_s30 = smov 4  }
  0x10   : > { %155 = sbr.rel (%p117_p10) target bundleno = 671 (0x29f), region = 32 }
  0x11   : > { %p833_p12 = pnand %p840_p9, %p832_p11 }
  0x13   : > { %835 = dma.hbm_to_vmem [thread:$0]  (!%p833_p12), %s128_s26, 4096, %s130_s28, [#allocation3], %s993_s29, %s993_s29, %s994_s30  }
  0x15   : > { %969 = dma.done.wait (%p840_p9), [#allocation3], 4096  }
  0x16   : > { %971 = vsyncadd (%p840_p9), [#allocation3], 4294963200  ;;  %v801_v0 = vld [vmem:[#allocation2 + $0x38] sm:$0xff]  ;;  %v800_v1 = vld [vmem:[#allocation2 + $0x30] sm:$0xff]  ;;  %p179_p13 = scmp.lt.s32.totalorder %s1036_s16, 1  ;;  %s176_s24 = sand.u32 1, %s982_s13  }
  0x17   : > { %253 = vmatpush.bf16.msra.mxu0 %v801_v0  ;;  %v799_v2 = vld [vmem:[#allocation2 + $0x28] sm:$0xff]  ;;  %v798_v3 = vld [vmem:[#allocation2 + $0x20] sm:$0xff]  ;;  %v797_v4 = vld [vmem:[#allocation2 + $0x18] sm:$0xff]  ;;  %s791_s25 = sshll.u32 %s1036_s16, 3  ;;  %s657_s26 = sshll.u32 %s176_s24, 3 }
  0x18   : > { %s180_s4 = scalar_select %p179_p13, %s1036_s16, 1  ;;  %v796_v5 = vld [vmem:[#allocation2 + $0x10] sm:$0xff]  ;;  %v795_v6 = vld [vmem:[#allocation2 + $0x8] sm:$0xff]  ;;  %v794_v7 = vld [vmem:[#allocation2] sm:$0xff] }
  0x19   : > { %v809_v10 = vld [vmem:[#allocation2 + $0x78] sm:$0xff]  ;;  %v808_v11 = vld [vmem:[#allocation2 + $0x70] sm:$0xff]  ;;  %v807_v12 = vld [vmem:[#allocation2 + $0x68] sm:$0xff]  ;;  %s575_s29 = scalar_lea.hbm %s1125_s3, %s791_s25  ;;  %s944_s17 = scalar_lea.hbm %s1125_s3, 16 }
  0x1a   : > { %s658_s5 = sshll.u32 %s180_s4, 3  ;;  %352 = vmatpush.bf16.msra.mxu1 %v809_v10  ;;  %v806_v13 = vld [vmem:[#allocation2 + $0x60] sm:$0xff]  ;;  %v805_v14 = vld [vmem:[#allocation2 + $0x58] sm:$0xff]  ;;  %v804_v15 = vld [vmem:[#allocation2 + $0x50] sm:$0xff]  ;;  %s579_s7 = sshll.u32 %s575_s29, 4  ;;  %s580_s7 = int_to_ptr.hbm [resolvable:$true] %s579_s7 }
  0x1b   : > { %254 = vmatpush.bf16.msra.mxu0 %v800_v1  ;;  %s182_s8 = scalar_lea.vmem %s1122_s0, %s658_s5  ;;  %v803_v16 = vld [vmem:[#allocation2 + $0x48] sm:$0xff]  ;;  %v802_v17 = vld [vmem:[#allocation2 + $0x40] sm:$0xff]  ;;  %v817_v37 = vld [vmem:[#allocation2 + $0xb8] sm:$0xff]  ;;  %s178_s5 = scalar_lea.vmem [#allocation5], %s657_s26 }
  0x1c   : > { %v183_v8 = vld [vmem:[%s182_s8] sm:$0xff]  ;;  %451 = vmatpush.bf16.msra.mxu2 %v817_v37  ;;  %v816_v38 = vld [vmem:[#allocation2 + $0xb0] sm:$0xff]  ;;  %v815_v39 = vld [vmem:[#allocation2 + $0xa8] sm:$0xff]  ;;  %s577_s6 = sshll.u32 %s178_s5, 4  ;;  %s565_s8 = scalar_lea.sflag [#allocation4], %s176_s24  ;;  %s578_s6 = int_to_ptr.vmem [resolvable:$true] %s577_s6 }
  0x1d   : > { %v184_v9 = vpack.c.bf16 %v183_v8, %v183_v8  ;;  %v878_v18 = vld [vmem:[%s1124_s2] ss:$0 sm:$0xff]  ;;  %v813_v41 = vld [vmem:[#allocation2 + $0x98] sm:$0xff]  ;;  %v812_v42 = vld [vmem:[#allocation2 + $0x90] sm:$0xff]  ;;  %s938_s16 = sshra.s32 %s580_s7, 4  ;;  %s939_s16 = int_to_ptr.hbm [resolvable:$true] %s938_s16 }
  0x1e   : > { %353 = vmatpush.bf16.msra.mxu1 %v808_v11  ;;  %v814_v40 = vld [vmem:[#allocation2 + $0xa0] sm:$0xff]  ;;  %v811_v43 = vld [vmem:[#allocation2 + $0x88] sm:$0xff]  ;;  %v825_v0 = vld [vmem:[#allocation2 + $0xf8] sm:$0xff]  ;;  %s940_s9 = scalar_lea.hbm %s939_s16, 8  ;;  %p945_p3 = scmp.lt.s32.totalorder %s939_s16, %s1125_s3 }
  0x1f   : > { %255 = vmatpush.bf16.msra.mxu0 %v799_v2  ;;  %v810_v44 = vld [vmem:[#allocation2 + $0x80] sm:$0xff]  ;;  %550 = vmatpush.bf16.msra.mxu3 %v825_v0  ;;  %v824_v1 = vld [vmem:[#allocation2 + $0xf0] sm:$0xff]  ;;  %v823_v2 = vld [vmem:[#allocation2 + $0xe8] sm:$0xff]  ;;  %p941_p0 = scmp.ne.s32.totalorder %s939_s16, %s940_s9  ;;  %p946_p4 = scmp.lt.s32.totalorder %s944_s17, %s940_s9 }
  0x20   : > { %452 = vmatpush.bf16.msra.mxu2 %v816_v38  ;;  %v879_v45 = vld [vmem:[%s1124_s2 + $0x1] ss:$0 sm:$0xff]  ;;  %v880_v8 = vld [vmem:[%s1124_s2 + $0x2] ss:$0 sm:$0xff] }
  0x21   : > { %p942_p1 = pnand %p941_p0, %p1053_p5  ;;  %p947_p7 = por %p946_p4, %p945_p3 }
  0x22   : > { %354 = vmatpush.bf16.msra.mxu1 %v807_v12 }
  0x23   : > { %256 = vmatpush.bf16.msra.mxu0 %v798_v3  ;;  %551 = vmatpush.bf16.msra.mxu3 %v824_v1  ;;  %v822_v3 = vld [vmem:[#allocation2 + $0xe0] sm:$0xff]  ;;  %p943_p2 = pneg %p942_p1 }
  0x24   : > { %453 = vmatpush.bf16.msra.mxu2 %v815_v39 }
  0x25   : > { %p948_p8 = pnand %p947_p7, %p943_p2 }
  0x26   : > { %355 = vmatpush.bf16.msra.mxu1 %v806_v13 }
  0x27   : > { %257 = vmatpush.bf16.msra.mxu0 %v797_v4  ;;  %552 = vmatpush.bf16.msra.mxu3 %v823_v2  ;;  %v821_v4 = vld [vmem:[#allocation2 + $0xd8] sm:$0xff] }
  0x28   : > { %454 = vmatpush.bf16.msra.mxu2 %v814_v40 }
  0x2a   : > { %356 = vmatpush.bf16.msra.mxu1 %v805_v14 }
  0x2b   : > { %258 = vmatpush.bf16.msra.mxu0 %v796_v5  ;;  %553 = vmatpush.bf16.msra.mxu3 %v822_v3  ;;  %v820_v5 = vld [vmem:[#allocation2 + $0xd0] sm:$0xff] }
  0x2c   : > { %455 = vmatpush.bf16.msra.mxu2 %v813_v41 }
  0x2e   : > { %357 = vmatpush.bf16.msra.mxu1 %v804_v15 }
  0x2f   : > { %259 = vmatpush.bf16.msra.mxu0 %v795_v6  ;;  %554 = vmatpush.bf16.msra.mxu3 %v821_v4  ;;  %v819_v6 = vld [vmem:[#allocation2 + $0xc8] sm:$0xff] }
  0x30   : > { %456 = vmatpush.bf16.msra.mxu2 %v812_v42 }
  0x32   : > { %358 = vmatpush.bf16.msra.mxu1 %v803_v16 }
  0x33   : > { %260 = vmatpush.bf16.msra.mxu0 %v794_v7  ;;  %555 = vmatpush.bf16.msra.mxu3 %v820_v5  ;;  %v818_v7 = vld [vmem:[#allocation2 + $0xc0] sm:$0xff] }
  0x34   : > { %457 = vmatpush.bf16.msra.mxu2 %v811_v43 }
  0x36   : > { %261 = vmatmul.bf16.vlgmr.msra.gmra.mxu0 %v184_v9  ;;  %359 = vmatpush.bf16.msra.mxu1 %v802_v17 }
  0x37   : > { %556 = vmatpush.bf16.msra.mxu3 %v819_v6 }
  0x38   : > { %458 = vmatpush.bf16.msra.mxu2 %v810_v44 }
  0x3b   : > { %557 = vmatpush.bf16.msra.mxu3 %v818_v7 }
  0xb3   : > { %v262_v19 = vpop.f32.mrf.mxu0 }
  0xb4   : > { %v263_v20 = vadd.f32 %v878_v18, %v262_v19 }
  0xb6   : > { %v267_v21 = vand.u32 2147483647, %v263_v20  ;;  %v266_v33 = vmax.f32 %v263_v20, 0.0 }
  0xb8   : > { %v268_v22 = vsub.f32 0.0, %v267_v21 }
  0xba   : > { %v269_v23 = vmul.f32 1.442695, %v268_v22 }
  0xbb   : > { %v264_v24 = vpop.f32.mrf.mxu0 }
  0xbc   : > { %882 = vpow2.f32 %v269_v23 }
  0xc2   : > { %v883_v25 = vpop.eup %882 }
  0xc3   : > { %v271_v26 = vadd.f32 1.0, %v883_v25  ;;  %v274_v27 = vmul.f32 -0.5, %v883_v25  ;;  %v277_v29 = vand.u32 2147483647, %v883_v25 }
  0xc5   : > { %884 = vlog2.f32 %v271_v26  ;;  %v275_v28 = vadd.f32 1.0, %v274_v27  ;;  %vm278_vm0 = vcmp.lt.f32.partialorder %v277_v29, 0.0004427343  ;;  %v881_v27 = vld [vmem:[%s1124_s2 + $0x3] ss:$0 sm:$0xff] }
  0xc7   : > { %v276_v32 = vmul.f32 %v883_v25, %v275_v28 }
  0xcb   : > { %v885_v30 = vpop.eup %884 }
  0xcc   : > { %v273_v31 = vmul.f32 0.6931472, %v885_v30 }
  0xce   : > { %v279_v34 = vsel %vm278_vm0, %v276_v32, %v273_v31 }
  0xcf   : > { %v280_v35 = vadd.f32 %v279_v34, %v266_v33 }
  0xd1   : > { %v281_v36 = vpack.c.bf16 %v280_v35, %v280_v35 }
  0xd3   : > { %360 = vmatmul.bf16.vlgmr.msra.gmra.mxu1 %v281_v36 }
 0x150   : > { %v361_v46 = vpop.f32.mrf.mxu1 }
 0x151   : > { %v362_v47 = vadd.f32 %v879_v45, %v361_v46 }
 0x153   : > { %v366_v48 = vand.u32 2147483647, %v362_v47  ;;  %v365_v60 = vmax.f32 %v362_v47, 0.0 }
 0x155   : > { %v367_v49 = vsub.f32 0.0, %v366_v48 }
 0x157   : > { %v368_v50 = vmul.f32 1.442695, %v367_v49 }
 0x158   : > { %v363_v51 = vpop.f32.mrf.mxu1 }
 0x159   : > { %886 = vpow2.f32 %v368_v50 }
 0x15f   : > { %v887_v52 = vpop.eup %886 }
 0x160   : > { %v370_v53 = vadd.f32 1.0, %v887_v52  ;;  %v373_v54 = vmul.f32 -0.5, %v887_v52  ;;  %v376_v56 = vand.u32 2147483647, %v887_v52 }
 0x162   : > { %888 = vlog2.f32 %v370_v53  ;;  %v374_v55 = vadd.f32 1.0, %v373_v54  ;;  %vm377_vm1 = vcmp.lt.f32.partialorder %v376_v56, 0.0004427343 }
 0x164   : > { %v375_v59 = vmul.f32 %v887_v52, %v374_v55 }
 0x168   : > { %v889_v57 = vpop.eup %888 }
 0x169   : > { %v372_v58 = vmul.f32 0.6931472, %v889_v57 }
 0x16b   : > { %v378_v61 = vsel %vm377_vm1, %v375_v59, %v372_v58 }
 0x16c   : > { %v379_v62 = vadd.f32 %v378_v61, %v365_v60 }
 0x16e   : > { %v380_v63 = vpack.c.bf16 %v379_v62, %v379_v62 }
 0x170   : > { %459 = vmatmul.bf16.vlgmr.msra.gmra.mxu2 %v380_v63 }
 0x1f3   : > { %v460_v9 = vpop.f32.mrf.mxu2 }
 0x1f4   : > { %v461_v10 = vadd.f32 %v880_v8, %v460_v9 }
 0x1f6   : > { %v465_v11 = vand.u32 2147483647, %v461_v10  ;;  %v464_v23 = vmax.f32 %v461_v10, 0.0 }
 0x1f8   : > { %v466_v12 = vsub.f32 0.0, %v465_v11 }
 0x1fa   : > { %v467_v13 = vmul.f32 1.442695, %v466_v12 }
 0x1fb   : > { %v462_v14 = vpop.f32.mrf.mxu2 }
 0x1fc   : > { %890 = vpow2.f32 %v467_v13 }
 0x202   : > { %v891_v15 = vpop.eup %890 }
 0x203   : > { %v469_v16 = vadd.f32 1.0, %v891_v15  ;;  %v472_v17 = vmul.f32 -0.5, %v891_v15  ;;  %v475_v19 = vand.u32 2147483647, %v891_v15 }
 0x205   : > { %892 = vlog2.f32 %v469_v16  ;;  %v473_v18 = vadd.f32 1.0, %v472_v17  ;;  %vm476_vm2 = vcmp.lt.f32.partialorder %v475_v19, 0.0004427343 }
 0x207   : > { %v474_v22 = vmul.f32 %v891_v15, %v473_v18 }
 0x20b   : > { %v893_v20 = vpop.eup %892 }
 0x20c   : > { %v471_v21 = vmul.f32 0.6931472, %v893_v20 }
 0x20e   : > { %v477_v24 = vsel %vm476_vm2, %v474_v22, %v471_v21 }
 0x20f   : > { %v478_v25 = vadd.f32 %v477_v24, %v464_v23 }
 0x211   : > { %v479_v26 = vpack.c.bf16 %v478_v25, %v478_v25 }
 0x213   : > { %558 = vmatmul.bf16.vlgmr.msra.gmra.mxu3 %v479_v26 }
 0x296   : > { %v559_v28 = vpop.f32.mrf.mxu3 }
 0x297   : > { %v560_v29 = vadd.f32 %v881_v27, %v559_v28 }
 0x299   : > { %563 = vst [vmem:[%s178_s5] sm:$0xff] %v560_v29 }
 0x29a   : > { %951 = shalt.err (!%p948_p8)
}
 0x29b   : > { %830 = dma.vmem_to_hbm [thread:$0]  (%p1053_p5), %s578_s6, 128, %s580_s7, %s565_s8  }
 0x29e   : > { %v561_v30 = vpop.f32.mrf.mxu3 }
 0x29f PF: > { %p842_p9 = scmp.ge.s32.totalorder %s990_s15, 2  ;;  %s591_s24 = sand.u32 1, %s978_s12  }
 0x2a0   : > { %s592_s25 = scalar_lea.sflag [#allocation4], %s591_s24 }
 0x2a1   : > { %p837_p10 = pnand %p842_p9, %p1057_p6 }
 0x2a3   : > { %p838_p11 = pneg %p837_p10 }
 0x2a5   : > { %973 = dma.done.wait (%p838_p11), %s592_s25, 128  }
 0x2a6   : > { %975 = vsyncadd (%p838_p11), %s592_s25, 4294967168  ;;  %p14_p12 = scmp.ge.s32.totalorder %s1040_s18, 4   ;;  %s1128_s12 = smov %s982_s13 }
 0x2a7   : > { %s1129_s13 = smov %s986_s14  ;;  %s1130_s14 = smov %s1051_s21 }
 0x2a8   : > { %s1131_s15 = smov %s1040_s18  ;;  %16 = sbr.rel (!%p14_p12) target bundleno = 4 (0x4), region = 78 }
 0x2ad   :  { %598 = vsyncpa [#allocation3], 1 }
 0x2ae   :  { %600 = vsyncpa [#allocation3 + $0x1], 1 }
 0x2af   :  { %601 = vsyncpa [#allocation4], 1 }
 0x2b0   :  { %603 = vsyncpa [#allocation4 + $0x1], 1 }

</bundles_post_ra>
